<compile_context>
chip_gen: v6e
topology: v6e:2x2x1
jax: 0.10.0
libtpu: 0.0.40
codegen_flags: <defaults>
</compile_context>

<pallas_src>
import functools

import jax
import jax.numpy as jnp
import numpy as np
from jax.experimental import pallas as pl
from jax.experimental.pallas import tpu as pltpu


def _gcn_kernel_resident(a_ref, xs_ref, o_ref, *, tk):
    """One (row-tile i, k-tile) step of  A @ X_scaled  with VMEM-resident X.

    a_ref  : (tm, tk) int8 adjacency tile (0/1), upcast to bf16 in-kernel
    xs_ref : (Nk, F)  bf16 out_norm-scaled features (VMEM-resident)
    o_ref  : (tm, F)  f32  output tile; doubles as the k-accumulator
    """
    k = pl.program_id(1)

    @pl.when(k == 0)
    def _init():
        o_ref[...] = jnp.zeros_like(o_ref)

    start = pl.multiple_of(k * tk, tk)
    a_bf16 = a_ref[...].astype(jnp.bfloat16)
    o_ref[...] += jnp.dot(a_bf16, xs_ref[pl.ds(start, tk), :],
                          preferred_element_type=jnp.float32)


def _gcn_kernel_streamed(a_ref, xs_ref, o_ref):
    """Same as above but X is streamed per k-tile: xs_ref is (tk, F)."""
    k = pl.program_id(1)

    @pl.when(k == 0)
    def _init():
        o_ref[...] = jnp.zeros_like(o_ref)

    a_bf16 = a_ref[...].astype(jnp.bfloat16)
    o_ref[...] += jnp.dot(a_bf16, xs_ref[...],
                          preferred_element_type=jnp.float32)


def _vmem_budget_bytes():
    """~85% of this generation's physical per-core VMEM (conservative fallback)."""
    try:
        cap = int(pltpu.get_tpu_info().vmem_capacity_bytes)
    except Exception:
        cap = 64 << 20  # assume the smallest generation (v7x) if query fails
    return int(0.85 * cap)


def prepare_gcn_graph(adj, *, tm=256, tk=None):
    """One-time, per-static-graph preparation (hoisted off the hot path).

    adj : (N, N) dense 0/1 adjacency, adj[dst, src] = 1 iff edge src->dst.
          Must be unweighted; the int8 stream is exact only for 0/1 entries.
    """
    N = adj.shape[0]
    assert adj.shape == (N, N)

    if tk is None:
        # ~1 MiB int8 A tiles (256 x 4096) on large graphs; shrink for small
        # ones so we do not pad the contraction axis needlessly.
        tk = min(4096, max(512, pl.cdiv(N, 512) * 512))

    # Degree reductions once per graph (f32, exact for 0/1 entries).
    adj_f32 = adj.astype(jnp.float32)
    out_deg = jnp.clip(jnp.sum(adj_f32, axis=0), 1.0)   # per-source
    in_deg = jnp.clip(jnp.sum(adj_f32, axis=1), 1.0)    # per-destination
    out_norm = jnp.power(out_deg, -0.5).reshape(-1, 1)
    in_norm = jnp.power(in_deg, -0.5).reshape(-1, 1)

    # 0/1 adjacency is exact in int8; halves the bf16 HBM stream. Zero padding
    # is numerically inert (padded rows/cols contribute zeros, sliced off).
    Nm = pl.cdiv(N, tm) * tm
    Nk = pl.cdiv(N, tk) * tk
    adj_i8 = jnp.pad(adj.astype(jnp.int8), ((0, Nm - N), (0, Nk - N)))

    return dict(adj_i8=adj_i8, out_norm=out_norm, in_norm=in_norm,
                n=N, nm=Nm, nk=Nk, tm=tm, tk=tk)


def gcn_propagate(prep, u_f, v_f):
    """Hot path:  in_norm * (A @ (out_norm * cat([u_f, v_f])))."""
    node_f = jnp.concatenate([u_f, v_f], axis=0).astype(jnp.float32)
    N, F = node_f.shape
    assert N == prep["n"]
    tm, tk, Nm, Nk = prep["tm"], prep["tk"], prep["nm"], prep["nk"]

    # Fold the per-source scaling into the features once (one pass over N*F,
    # negligible vs. the N^2 adjacency traffic); bf16 MXU operand.
    xs = (node_f * prep["out_norm"]).astype(jnp.bfloat16)
    xs_p = jnp.pad(xs, ((0, Nk - N), (0, 0)))

    vmem_cap = _vmem_budget_bytes()
    x_bytes_1buf = Nk * F * 2

    if x_bytes_1buf <= vmem_cap // 3:
        # VMEM-resident X: DMA'd once, not once per row tile.
        kernel = functools.partial(_gcn_kernel_resident, tk=tk)
        if 2 * x_bytes_1buf <= vmem_cap // 3:
            # Tiny: default double-buffering is harmless.
            x_spec = pl.BlockSpec((Nk, F), lambda i, k: (0, 0))
            x_bytes = 2 * x_bytes_1buf
        else:
            # Single-buffer the grid-invariant X to halve its footprint.
            x_spec = pl.BlockSpec((Nk, F), lambda i, k: (0, 0),
                                  pipeline_mode=pl.Buffered(1))
            x_bytes = x_bytes_1buf
    else:
        # Large-N fallback: stream X per k-tile. Extra traffic is only (F/tm)
        # of the A stream, far cheaper than shrinking A tiles or OOMing VMEM.
        kernel = _gcn_kernel_streamed
        x_spec = pl.BlockSpec((tk, F), lambda i, k: (k, 0))
        x_bytes = 2 * tk * F * 2

    vmem_est = (x_bytes
                + 2 * tm * tk * 1      # double-buffered int8 A tiles
                + 2 * tm * F * 4)      # f32 output/accumulator block
    vmem_limit = min(vmem_cap, max(int(1.2 * vmem_est) + (2 << 20), 32 << 20))

    out = pl.pallas_call(
        kernel,
        out_shape=jax.ShapeDtypeStruct((Nm, F), jnp.float32),
        grid_spec=pltpu.PrefetchScalarGridSpec(
            num_scalar_prefetch=0,
            grid=(Nm // tm, Nk // tk),
            in_specs=[
                pl.BlockSpec((tm, tk), lambda i, k: (i, k)),   # int8 A tile
                x_spec,                                        # scaled X (bf16)
            ],
            out_specs=pl.BlockSpec((tm, F), lambda i, k: (i, 0)),
        ),
        compiler_params=pltpu.CompilerParams(
            dimension_semantics=("parallel", "arbitrary"),
            vmem_limit_bytes=vmem_limit,
        ),
    )(prep["adj_i8"], xs_p)

    # Per-destination normalization: one fused N*F elementwise op, outside the
    # kernel (removes a lane-padded per-row-tile DMA and the epilogue branch).
    return prep["in_norm"] * out[:N]


def gcn_layer(adj, u_f, v_f, *, tm=256, tk=None):
    """Pallas implementation of GCNLayer.forward (LightGCN propagation)."""
    return gcn_propagate(prepare_gcn_graph(adj, tm=tm, tk=tk), u_f, v_f)


def _reference(adj, u_f, v_f):
    node_f = jnp.concatenate([u_f, v_f], axis=0).astype(jnp.float32)
    adj = adj.astype(jnp.float32)
    out_norm = jnp.power(jnp.clip(jnp.sum(adj, axis=0), 1.0), -0.5).reshape(-1, 1)
    in_norm = jnp.power(jnp.clip(jnp.sum(adj, axis=1), 1.0), -0.5).reshape(-1, 1)
    agg = jnp.matmul(adj, out_norm * node_f, precision=jax.lax.Precision.HIGHEST)
    return in_norm * agg


if __name__ == "__main__":
    key = jax.random.PRNGKey(0)
    k_u, k_v, k_a = jax.random.split(key, 3)

    # Small, non-tile-multiple sizes to exercise padding; Nm/tm == 2 so the
    # parallel row-tile axis can shard across both TensorCores on v7x.
    num_users, num_items, feat = 250, 230, 128
    N = num_users + num_items

    u_f = jax.random.normal(k_u, (num_users, feat), dtype=jnp.float32)
    v_f = jax.random.normal(k_v, (num_items, feat), dtype=jnp.float32)

    # Bipartite random graph, symmetrized (undirected), as dense 0/1 adjacency.
    ui = (jax.random.uniform(k_a, (num_users, num_items)) < 0.05).astype(jnp.float32)
    adj = jnp.zeros((N, N), dtype=jnp.float32)
    adj = adj.at[:num_users, num_users:].set(ui)
    adj = adj.at[num_users:, :num_users].set(ui.T)

    # Per-graph prep done once; reused for every propagation (LightGCN style).
    prep = prepare_gcn_graph(adj)
    out = jax.block_until_ready(gcn_propagate(prep, u_f, v_f))
    ref = jax.block_until_ready(_reference(adj, u_f, v_f))

    # bf16 feature operand -> ~0.4% relative rounding vs. the f32 reference.
    np.testing.assert_allclose(np.asarray(out), np.asarray(ref),
                               rtol=1e-2, atol=1e-2)
    print("KERNEL_OK")
</pallas_src>

<mosaic_0001>
module attributes {stable_mosaic.version = 11 : i64} {
  func.func @_gcn_kernel_resident(%arg0: i32, %arg1: i32, %arg2: memref<256x512xi8, #tpu.memory_space<vmem>>, %arg3: memref<512x128xbf16, #tpu.memory_space<vmem>>, %arg4: memref<256x128xf32, #tpu.memory_space<vmem>>) attributes {dimension_semantics = [#tpu.dimension_semantics<parallel>, #tpu.dimension_semantics<arbitrary>], iteration_bounds = array<i64: 2, 1>, scalar_prefetch = 0 : i64, scratch_operands = 0 : i64, tpu.core_type = #tpu.core_type<tc>, window_params = [{transform_indices = @transform_0, window_bounds = array<i64: 256, 512>}, {pipeline_mode = #tpu.pipeline_mode<synchronous>, transform_indices = @transform_1, window_bounds = array<i64: 512, 128>}, {transform_indices = @transform_2, window_bounds = array<i64: 256, 128>}]} {
    %c0_i32 = arith.constant 0 : i32
    %0 = arith.cmpi eq, %arg1, %c0_i32 : i32
    %1 = arith.extui %0 : i1 to i32
    %c0_i32_0 = arith.constant 0 : i32
    %2 = arith.cmpi ne, %1, %c0_i32_0 : i32
    scf.if %2 {
      %cst_7 = arith.constant 0.000000e+00 : f32
      %13 = vector.broadcast %cst_7 : f32 to vector<256x128xf32>
      %c0_8 = arith.constant 0 : index
      %c0_9 = arith.constant 0 : index
      %14 = vector.load %arg4[%c0_8, %c0_9] : memref<256x128xf32, #tpu.memory_space<vmem>>, vector<256x128xf32>
      tpu.vector_store %arg4[%c0_8, %c0_9], %13 {strides = array<i32>} : memref<256x128xf32, #tpu.memory_space<vmem>>, vector<256x128xf32>,
    } else {
    }
    %c512_i32 = arith.constant 512 : i32
    %3 = arith.muli %arg1, %c512_i32 : i32
    %4 = tpu.assume_multiple %3, 512 : i32
    %c0 = arith.constant 0 : index
    %c0_1 = arith.constant 0 : index
    %5 = vector.load %arg2[%c0, %c0_1] : memref<256x512xi8, #tpu.memory_space<vmem>>, vector<256x512xi8>
    %6 = arith.sitofp %5 : vector<256x512xi8> to vector<256x512xbf16>
    %c0_2 = arith.constant 0 : index
    %c0_3 = arith.constant 0 : index
    %7 = vector.load %arg4[%c0_2, %c0_3] : memref<256x128xf32, #tpu.memory_space<vmem>>, vector<256x128xf32>
    %8 = arith.index_cast %4 : i32 to index
    %c0_4 = arith.constant 0 : index
    %9 = vector.load %arg3[%8, %c0_4] : memref<512x128xbf16, #tpu.memory_space<vmem>>, vector<512x128xbf16>
    %cst = arith.constant dense<0.000000e+00> : vector<256x128xf32>
    %10 = tpu.matmul %6, %9, %cst {dimension_numbers = #tpu.dot_dimension_numbers<[1], [0], [0], [1], [0, 0, 1, 1], [], []>} : vector<256x512xbf16>, vector<512x128xbf16>, vector<256x128xf32> -> vector<256x128xf32>
    %11 = arith.addf %7, %10 : vector<256x128xf32>
    %c0_5 = arith.constant 0 : index
    %c0_6 = arith.constant 0 : index
    %12 = vector.load %arg4[%c0_5, %c0_6] : memref<256x128xf32, #tpu.memory_space<vmem>>, vector<256x128xf32>
    tpu.vector_store %arg4[%c0_5, %c0_6], %11 {strides = array<i32>} : memref<256x128xf32, #tpu.memory_space<vmem>>, vector<256x128xf32>,
    return
  }
  func.func @transform_0(%arg0: i32, %arg1: i32) -> (i32, i32) {
    %c0_i32 = arith.constant 0 : i32
    return %arg0, %arg1 : i32, i32
  }
  func.func @transform_1(%arg0: i32, %arg1: i32) -> (i32, i32) {
    %c0_i32 = arith.constant 0 : i32
    %c0_i32_0 = arith.constant 0 : i32
    %c0_i32_1 = arith.constant 0 : i32
    return %c0_i32, %c0_i32_0 : i32, i32
  }
  func.func @transform_2(%arg0: i32, %arg1: i32) -> (i32, i32) {
    %c0_i32 = arith.constant 0 : i32
    %c0_i32_0 = arith.constant 0 : i32
    return %arg0, %c0_i32 : i32, i32
  }
}

</mosaic_0001>

<bundles_post_ra>
// kernel: tpu_custom_call.1
= control target key start
LH: loop header
LB: loop body
LE: loop exit
PB: predicated region body
PF: predicated region fallthrough
CT: control target
= control target key end

     0   :  { %7 = vsyncpa [#allocation3], 0  ;;  %s1926_s0 = inlined_call_operand.hbm [shape: s8[512,512], index: 0, kind: input, shape index: {}]   ;;  %s1927_s1 = inlined_call_operand.hbm [shape: bf16[512,128], index: 1, kind: input, shape index: {}]   ;;  %s1928_s2 = inlined_call_operand.hbm [shape: f32[512,128], index: 2, kind: output, shape index: {}]  }
   0x1   :  { %9 = vsyncpa [#allocation3 + $0x1], 0 }
   0x2   :  { %10 = vsyncpa [#allocation6], 0 }
   0x3   :  { %11 = vsyncpa [#allocation4], 0 }
   0x4   :  { %13 = vsyncpa [#allocation4 + $0x1], 0  ;;  %s1672_s9 = smov 0   ;;  %s1674_s10 = smov 0  }
   0x5   :  { %s1676_s11 = smov 0   ;;  %s1678_s12 = smov 0  }
   0x6   :  { %s1680_s13 = smov 0   ;;  %s1682_s14 = smov 0  }
   0x7 LB: > { %s1119_s15 = sadd.s32 4294967295, %s1646_s14   ;;  %s1120_s16 = sadd.s32 4294967294, %s1646_s14   ;;  %s1646_s14 = sphi %s1682_s14, %s19_s14   ;;  %s1642_s13 = sphi %s1680_s13, %s1946_s13   ;;  %s1638_s12 = sphi %s1678_s12, %s1945_s12   ;;  %s1634_s11 = sphi %s1676_s11, %s1944_s11   ;;  %s1630_s10 = sphi %s1674_s10, %s1943_s10   ;;  %s1626_s9 = sphi %s1672_s9, %s1942_s9  }
   0x8   : > { %p53_p0 = scmp.ne.s32.totalorder %s1630_s10, %s1626_s9  ;;  %p1706_p1 = scmp.eq.s32.totalorder %s1119_s15, 0 }
   0x9   : > { %p1710_p2 = scmp.eq.s32.totalorder %s1119_s15, 1  ;;  %p104_p3 = scmp.eq.s32.totalorder %s1120_s16, 1 }
   0xa   : > { %p1716_p4 = por %p1706_p1, %p53_p0  ;;  %p1121_p5 = scmp.ge.s32.totalorder %s1646_s14, 1 }
   0xb   : > { %p1721_p6 = por %p104_p3, %p53_p0  ;;  %p111_p7 = scmp.lt.s32.totalorder %s1646_s14, 3 }
   0xc   : > { %s1932_s19 = scalar_select %p1716_p4, 1, 0 }
   0xd   : > { %s1933_s20 = scalar_select %p1721_p6, 1, 0 }
   0xe   : > { %p1726_p8 = pnand %p1121_p5, %p111_p7  ;;  %s1648_s22 = smov [#allocation5]  }
   0xf   : > { %s123_s23 = sshll.u32 %s1648_s22, 4  ;;  %s31_s25 = sadd.s32 1, %s1642_s13  ;;  %s124_s23 = int_to_ptr.vmem [resolvable:$true] %s123_s23 }
  0x10   : > { %p1404_p9 = pneg %p1726_p8  ;;  %s1519_s26 = scalar_lea.vmem %s124_s23, 4096 }
  0x11   : > { %p1520_p13 = scmp.ne.s32.totalorder %s124_s23, %s1519_s26  ;;  %p1527_p5 = scmp.lt.s32.totalorder %s124_s23, %s124_s23 }
  0x12   : > { %p1735_p11 = pnand %p1404_p9, %p1706_p1  ;;  %p1528_p7 = scmp.lt.s32.totalorder %s1519_s26, %s1519_s26 }
  0x14   : > { %p1510_p12 = pneg %p1735_p11  ;;  %p1529_p6 = por %p1528_p7, %p1527_p5 }
  0x16   : > { %p1522_p0 = pnand %p1520_p13, %p1510_p12 }
  0x18   : > { %p1523_p3 = pneg %p1522_p0 }
  0x1a   : > { %p1530_p4 = pnand %p1529_p6, %p1523_p3 }
  0x1c   : > { %1533 = shalt.err (!%p1530_p4)
}
  0x1d   : > { %s1649_s27 = smov 64   ;;  %s1650_s28 = smov 4  }
  0x1e   : > { %1407 = dma.hbm_to_vmem [thread:$0]  (!%p1735_p11), %s1927_s1, 4096, %s124_s23, [#allocation6], %s1649_s27, %s1649_s27, %s1650_s28  }
  0x1f   : > { %p33_p6 = scmp.ge.s32.totalorder %s31_s25, 2  ;;  %s40_s3 = sadd.s32 1, %s1634_s11 }
  0x20   : > { %p47_p4 = scmp.ne.s32.totalorder %s1634_s11, %s1630_s10  ;;  %p48_p9 = scmp.eq.s32.totalorder %s1646_s14, 0 }
  0x21   : > { %s1948_s25 = smov (%p33_p6, %s31_s25), 0  ;;  %p1417_p0 = scmp.lt.s32.totalorder %s1646_s14, 2 }
  0x22   : > { %p1753_p12 = por %p48_p9, %p47_p4  ;;  %p1759_p13 = por %p1710_p2, %p47_p4 }
  0x23   : > { %s35_s6 = ssub.s32 %s1642_s13, %s1948_s25  ;;  %s137_s7 = sand.u32 1, %s1634_s11  }
  0x24   : > { %p38_p11 = scmp.eq.s32.totalorder %s35_s6, 0  ;;  %s1124_s8 = sshll.u32 %s137_s7, 8 }
  0x25   : > { %s1170_s16 = sshll.u32 %s1642_s13, 12  ;;  %s141_s26 = scalar_lea.vmem [#allocation2], %s1124_s8 }
  0x26   : > { %s1768_s15 = scalar_select %p38_p11, %s1634_s11, %s40_s3  }
  0x27   : > { %s150_s24 = scalar_lea.hbm %s1926_s0, %s1170_s16  ;;  %s151_s27 = sshll.u32 %s141_s26, 4  ;;  %s152_s27 = int_to_ptr.vmem [resolvable:$true] %s151_s27 }
  0x28   : > { %p1776_p2 = pnand %p1417_p0, %p1753_p12  ;;  %s138_s28 = scalar_lea.sflag [#allocation3], %s137_s7 }
  0x29   : > { %s1547_s29 = scalar_lea.vmem %s152_s27, 4096  ;;  %s1651_s30 = smov [#allocation2]  }
  0x2a   : > { %p1536_p3 = pneg %p1776_p2  ;;  %p1548_p5 = scmp.ne.s32.totalorder %s152_s27, %s1547_s29 }
  0x2b   : > { %s1552_s3 = sshll.u32 %s1651_s30, 4  ;;  %s1553_s3 = int_to_ptr.vmem [resolvable:$false] %s1552_s3 }
  0x2c   : > { %p1550_p7 = pnand %p1548_p5, %p1536_p3  ;;  %s1554_s6 = scalar_lea.vmem %s1553_s3, 8192 }
  0x2d   : > { %p1555_p4 = scmp.lt.s32.totalorder %s152_s27, %s1553_s3  ;;  %p1556_p9 = scmp.lt.s32.totalorder %s1554_s6, %s1547_s29 }
  0x2e   : > { %p1551_p6 = pneg %p1550_p7 }
  0x2f   : > { %p1557_p11 = por %p1556_p9, %p1555_p4 }
  0x31   : > { %p1558_p10 = pnand %p1557_p11, %p1551_p6 }
  0x33   : > { %1561 = shalt.err (!%p1558_p10)
}
  0x34   : > { %s1652_s4 = smov 512   ;;  %s1653_s8 = smov 32  }
  0x35   : > { %1411 = dma.hbm_to_vmem [thread:$0]  (!%p1776_p2), %s150_s24, 4096, %s152_s27, %s138_s28, %s1652_s4, %s1652_s4, %s1653_s8  }
  0x36   : > { %163 = sbr.rel (%p1726_p8) target bundleno = 434 (0x1b2), region = 28  ;;  %s1787_s7 = sand.u32 (!%p1726_p8), 1, %s1630_s10  }
  0x37   : > { %s1129_s16 = sshll.u32 (!%p1726_p8), %s1787_s7, 8  ;;  %s166_s22 = scalar_lea.sflag (!%p1726_p8), [#allocation3], %s1787_s7 }
  0x38   : > { %s1793_s23 = scalar_lea.vmem (!%p1726_p8), [#allocation2], %s1129_s16  ;;  %p1939_p10 = scmp.ne.s32.totalorder (!%p1726_p8), %s1932_s19, 0 }
  0x3b   : > { %1613 = dma.done.wait (%p1939_p10), %s166_s22, 4096  }
  0x3c   : > { %1615 = vsyncadd (%p1939_p10), %s166_s22, 4294963200 }
  0x3d   : > { %1617 = dma.done.wait (%p1706_p1), [#allocation6], 4096  }
  0x3e   : > { %1619 = vsyncadd (%p1706_p1), [#allocation6], 4294963200  ;;  %v1476_v0 = vld [vmem:[#allocation5 + $0x78] sm:$0xff]   ;;  %v1480_v4 = vld [vmem:[#allocation5 + $0x70] sm:$0xff]   ;;  %s1837_s17 = scalar_lea.vmem [#allocation7], %s1129_s16  ;;  %s1171_s19 = sshll.u32 %s1638_s12, 12 }
  0x3f   : > { %v1477_v1 = vld [vmem:[#allocation5 + $0xf8] sm:$0xff]   ;;  %1172 = vmatprep.subr.bf16.mxu0 %v1476_v0  ;;  %v1481_v5 = vld [vmem:[#allocation5 + $0xf0] sm:$0xff]   ;;  %v1484_v8 = vld [vmem:[#allocation5 + $0x68] sm:$0xff]   ;;  %s1023_s21 = sshll.u32 %s1837_s17, 4  ;;  %s1875_s27 = scalar_lea.hbm %s1928_s2, %s1171_s19  ;;  %s1877_s21 = int_to_ptr.vmem [resolvable:$true] %s1023_s21 }
  0x40   : > { %v1478_v2 = vld [vmem:[#allocation5 + $0x38] sm:$0xff]   ;;  %1284 = vmatprep.subr.bf16.mxu1 %v1477_v1  ;;  %v1482_v6 = vld [vmem:[#allocation5 + $0x30] sm:$0xff]   ;;  %v1485_v9 = vld [vmem:[#allocation5 + $0xe8] sm:$0xff]   ;;  %s1010_s18 = scalar_lea.sflag [#allocation4], %s1787_s7  ;;  %s1562_s28 = scalar_lea.vmem %s1877_s21, 4096 }
  0x41   : > { %v1479_v3 = vld [vmem:[#allocation5 + $0xb8] sm:$0xff]   ;;  %1173 = vmatpush3.bf16.msra.mxu0 %v1478_v2  ;;  %v1483_v7 = vld [vmem:[#allocation5 + $0xb0] sm:$0xff]   ;;  %v1486_v10 = vld [vmem:[#allocation5 + $0x28] sm:$0xff]   ;;  %p1563_p1 = scmp.ne.s32.totalorder %s1877_s21, %s1562_s28  ;;  %s1654_s12 = smov [#allocation7]  }
  0x42   : > { %1285 = vmatpush3.bf16.msra.mxu1 %v1479_v3  ;;  %1174 = vmatprep.subr.bf16.mxu0 %v1480_v4  ;;  %v1487_v11 = vld [vmem:[#allocation5 + $0xa8] sm:$0xff]   ;;  %v1488_v12 = vld [vmem:[#allocation5 + $0x60] sm:$0xff]   ;;  %v1492_v16 = vld [vmem:[#allocation5 + $0x58] sm:$0xff]   ;;  %s1566_s29 = sshll.u32 %s1654_s12, 4  ;;  %s1567_s29 = int_to_ptr.vmem [resolvable:$false] %s1566_s29 }
  0x43   : > { %1286 = vmatprep.subr.bf16.mxu1 %v1481_v5  ;;  %v1489_v13 = vld [vmem:[#allocation5 + $0xe0] sm:$0xff]   ;;  %v1493_v17 = vld [vmem:[#allocation5 + $0xd8] sm:$0xff]   ;;  %v1496_v20 = vld [vmem:[#allocation5 + $0x50] sm:$0xff]   ;;  %p1564_p8 = pnand %p1563_p1, %p1759_p13  ;;  %s1568_s30 = scalar_lea.vmem %s1567_s29, 8192 }
  0x44   : > { %v1490_v14 = vld [vmem:[#allocation5 + $0x20] sm:$0xff]   ;;  %v1494_v18 = vld [vmem:[#allocation5 + $0x18] sm:$0xff]   ;;  %v1497_v21 = vld [vmem:[#allocation5 + $0xd0] sm:$0xff]   ;;  %p1569_p0 = scmp.lt.s32.totalorder %s1877_s21, %s1567_s29  ;;  %p1570_p2 = scmp.lt.s32.totalorder %s1568_s30, %s1562_s28 }
  0x45   : > { %1175 = vmatpush3.bf16.msra.mxu0 %v1482_v6  ;;  %v1491_v15 = vld [vmem:[#allocation5 + $0xa0] sm:$0xff]   ;;  %v1495_v19 = vld [vmem:[#allocation5 + $0x98] sm:$0xff]   ;;  %v1498_v22 = vld [vmem:[#allocation5 + $0x10] sm:$0xff]   ;;  %p1565_p12 = pneg %p1564_p8 }
  0x46   : > { %1287 = vmatpush3.bf16.msra.mxu1 %v1483_v7  ;;  %1176 = vmatprep.subr.bf16.mxu0 %v1484_v8  ;;  %v1499_v23 = vld [vmem:[#allocation5 + $0x90] sm:$0xff]   ;;  %v1500_v24 = vld [vmem:[#allocation5 + $0x48] sm:$0xff]   ;;  %v1504_v28 = vld [vmem:[#allocation5 + $0x40] sm:$0xff]   ;;  %p1571_p3 = por %p1570_p2, %p1569_p0 }
  0x47   : > { %1288 = vmatprep.subr.bf16.mxu1 %v1485_v9  ;;  %v1501_v25 = vld [vmem:[#allocation5 + $0xc8] sm:$0xff]   ;;  %v1505_v29 = vld [vmem:[#allocation5 + $0xc0] sm:$0xff]   ;;  %v238_v33 = vld [vmem:[%s1793_s23 + $0x18] sm:$0xff] }
  0x48   : > { %v1502_v26 = vld [vmem:[#allocation5 + $0x8] sm:$0xff]   ;;  %v1506_v30 = vld [vmem:[#allocation5] sm:$0xff]   ;;  %v270_v37 = vunpack.c.l.s8.bf16 %v238_v33  ;;  %v274_v38 = vunpack.c.h.s8.bf16 %v238_v33  ;;  %v237_v39 = vld [vmem:[%s1793_s23 + $0x10] sm:$0xff]  ;;  %p1572_p5 = pnand %p1571_p3, %p1565_p12 }
  0x49   : > { %1177 = vmatpush3.bf16.msra.mxu0 %v1486_v10  ;;  %v1503_v27 = vld [vmem:[#allocation5 + $0x88] sm:$0xff]   ;;  %v1507_v31 = vld [vmem:[#allocation5 + $0x80] sm:$0xff]   ;;  %v269_v41 = vunpack.c.l.s8.bf16 %v237_v39  ;;  %v242_v43 = vld [vmem:[%s1793_s23 + $0x38] sm:$0xff]  ;;  %v273_v45 = vunpack.c.h.s8.bf16 %v237_v39 }
  0x4a   : > { %1289 = vmatpush3.bf16.msra.mxu1 %v1487_v11  ;;  %1178 = vmatprep.subr.bf16.mxu0 %v1488_v12  ;;  %v236_v32 = vld [vmem:[%s1793_s23 + $0x8] sm:$0xff]  ;;  %v235_v34 = vld [vmem:[%s1793_s23] sm:$0xff]  ;;  %v278_v47 = vunpack.c.l.s8.bf16 %v242_v43  ;;  %v241_v49 = vld [vmem:[%s1793_s23 + $0x30] sm:$0xff]  ;;  %v282_v53 = vunpack.c.h.s8.bf16 %v242_v43 }
  0x4b   : > { %1290 = vmatprep.subr.bf16.mxu1 %v1489_v13  ;;  %v268_v35 = vunpack.c.l.s8.bf16 %v236_v32  ;;  %v272_v36 = vunpack.c.h.s8.bf16 %v236_v32  ;;  %v267_v40 = vunpack.c.l.s8.bf16 %v235_v34  ;;  %816 = vmatprep.mubr.bf16.mxu1 %v270_v37  ;;  %v240_v42 = vld [vmem:[%s1793_s23 + $0x28] sm:$0xff]  ;;  %v271_v44 = vunpack.c.h.s8.bf16 %v235_v34  ;;  %v239_v48 = vld [vmem:[%s1793_s23 + $0x20] sm:$0xff]  ;;  %v246_v55 = vld [vmem:[%s1793_s23 + $0x58] sm:$0xff] }
  0x4c   : > { %v276_v46 = vunpack.c.l.s8.bf16 %v240_v42  ;;  %v275_v50 = vunpack.c.l.s8.bf16 %v239_v48  ;;  %v277_v51 = vunpack.c.l.s8.bf16 %v241_v49  ;;  %v280_v52 = vunpack.c.h.s8.bf16 %v240_v42  ;;  %v244_v54 = vld [vmem:[%s1793_s23 + $0x48] sm:$0xff]  ;;  %v243_v60 = vld [vmem:[%s1793_s23 + $0x40] sm:$0xff]  ;;  %v245_v61 = vld [vmem:[%s1793_s23 + $0x50] sm:$0xff] }
  0x4d   : > { %1179 = vmatpush3.bf16.msra.mxu0 %v1490_v14  ;;  %655 = vmatprep.mubr.bf16.mxu0 %v268_v35  ;;  %v279_v56 = vunpack.c.h.s8.bf16 %v239_v48  ;;  %v281_v57 = vunpack.c.h.s8.bf16 %v241_v49  ;;  %v284_v58 = vunpack.c.l.s8.bf16 %v244_v54  ;;  %v286_v59 = vunpack.c.l.s8.bf16 %v246_v55  ;;  %v248_v2 = vld [vmem:[%s1793_s23 + $0x68] sm:$0xff]  ;;  %v250_v3 = vld [vmem:[%s1793_s23 + $0x78] sm:$0xff]  ;;  %v247_v8 = vld [vmem:[%s1793_s23 + $0x60] sm:$0xff] }
  0x4e   : > { %1291 = vmatpush3.bf16.msra.mxu1 %v1491_v15  ;;  %1180 = vmatprep.subr.bf16.mxu0 %v1492_v16  ;;  %v283_v62 = vunpack.c.l.s8.bf16 %v243_v60  ;;  %v285_v63 = vunpack.c.l.s8.bf16 %v245_v61  ;;  %v288_v0 = vunpack.c.h.s8.bf16 %v244_v54  ;;  %v290_v1 = vunpack.c.h.s8.bf16 %v246_v55  ;;  %v249_v9 = vld [vmem:[%s1793_s23 + $0x70] sm:$0xff]  ;;  %v252_v14 = vld [vmem:[%s1793_s23 + $0x88] sm:$0xff]  ;;  %v254_v15 = vld [vmem:[%s1793_s23 + $0x98] sm:$0xff] }
  0x4f   : > { %1292 = vmatprep.subr.bf16.mxu1 %v1493_v17  ;;  %v287_v4 = vunpack.c.h.s8.bf16 %v243_v60  ;;  %v289_v5 = vunpack.c.h.s8.bf16 %v245_v61  ;;  %v292_v6 = vunpack.c.l.s8.bf16 %v248_v2  ;;  %v294_v7 = vunpack.c.l.s8.bf16 %v250_v3  ;;  %v255_v32 = vld [vmem:[%s1793_s23 + $0xa0] sm:$0xff]  ;;  %v257_v33 = vld [vmem:[%s1793_s23 + $0xb0] sm:$0xff]  ;;  %v262_v39 = vld [vmem:[%s1793_s23 + $0xd8] sm:$0xff] }
  0x50   : > { %v291_v10 = vunpack.c.l.s8.bf16 %v247_v8  ;;  %v293_v11 = vunpack.c.l.s8.bf16 %v249_v9  ;;  %v296_v12 = vunpack.c.h.s8.bf16 %v248_v2  ;;  %v298_v13 = vunpack.c.h.s8.bf16 %v250_v3 }
  0x51   : > { %1181 = vmatpush3.bf16.msra.mxu0 %v1494_v18  ;;  %v295_v16 = vunpack.c.h.s8.bf16 %v247_v8  ;;  %v297_v17 = vunpack.c.h.s8.bf16 %v249_v9  ;;  %v300_v18 = vunpack.c.l.s8.bf16 %v252_v14  ;;  %v307_v34 = vunpack.c.l.s8.bf16 %v255_v32 }
  0x52   : > { %1293 = vmatpush3.bf16.msra.mxu1 %v1495_v19  ;;  %1182 = vmatprep.subr.bf16.mxu0 %v1496_v20  ;;  %v302_v19 = vunpack.c.l.s8.bf16 %v254_v15  ;;  %v251_v20 = vld [vmem:[%s1793_s23 + $0x80] sm:$0xff]  ;;  %v309_v35 = vunpack.c.l.s8.bf16 %v257_v33  ;;  %v318_v43 = vunpack.c.l.s8.bf16 %v262_v39  ;;  %v322_v49 = vunpack.c.h.s8.bf16 %v262_v39 }
  0x53   : > { %1294 = vmatprep.subr.bf16.mxu1 %v1497_v21  ;;  %v253_v21 = vld [vmem:[%s1793_s23 + $0x90] sm:$0xff] }
  0x55   : > { %1183 = vmatpush3.bf16.msra.mxu0 %v1498_v22  ;;  %v299_v22 = vunpack.c.l.s8.bf16 %v251_v20 }
  0x56   : > { %1295 = vmatpush3.bf16.msra.mxu1 %v1499_v23  ;;  %1184 = vmatprep.subr.bf16.mxu0 %v1500_v24  ;;  %v301_v23 = vunpack.c.l.s8.bf16 %v253_v21  ;;  %v304_v24 = vunpack.c.h.s8.bf16 %v252_v14 }
  0x57   : > { %1296 = vmatprep.subr.bf16.mxu1 %v1501_v25  ;;  %v306_v25 = vunpack.c.h.s8.bf16 %v254_v15 }
  0x59   : > { %1185 = vmatpush3.bf16.msra.mxu0 %v1502_v26  ;;  %v256_v26 = vld [vmem:[%s1793_s23 + $0xa8] sm:$0xff] }
  0x5a   : > { %1297 = vmatpush3.bf16.msra.mxu1 %v1503_v27  ;;  %1186 = vmatprep.subr.bf16.mxu0 %v1504_v28  ;;  %v258_v27 = vld [vmem:[%s1793_s23 + $0xb8] sm:$0xff]  ;;  %v303_v28 = vunpack.c.h.s8.bf16 %v251_v20 }
  0x5b   : > { %1298 = vmatprep.subr.bf16.mxu1 %v1505_v29  ;;  %v305_v29 = vunpack.c.h.s8.bf16 %v253_v21  ;;  %v314_v37 = vunpack.c.h.s8.bf16 %v258_v27 }
  0x5d   : > { %1187 = vmatpush3.bf16.msra.mxu0 %v1506_v30  ;;  %v308_v30 = vunpack.c.l.s8.bf16 %v256_v26 }
  0x5e   : > { %1299 = vmatpush3.bf16.msra.mxu1 %v1507_v31  ;;  %v310_v31 = vunpack.c.l.s8.bf16 %v258_v27 }
  0x60   : > { %656 = vmatmul.mubr.bf16.vlgmr.msra.gmra.mxu0 %v267_v40  ;;  %v311_v40 = vunpack.c.h.s8.bf16 %v255_v32 }
  0x61   : > { %817 = vmatmul.mubr.bf16.vlgmr.msra.gmra.mxu1 %v269_v41  ;;  %663 = vmatprep.mubr.bf16.mxu0 %v272_v36  ;;  %v312_v36 = vunpack.c.h.s8.bf16 %v256_v26  ;;  %v313_v41 = vunpack.c.h.s8.bf16 %v257_v33 }
  0x62   : > { %824 = vmatprep.mubr.bf16.mxu1 %v274_v38  ;;  %v260_v38 = vld [vmem:[%s1793_s23 + $0xc8] sm:$0xff] }
  0x63   : > { %v316_v42 = vunpack.c.l.s8.bf16 %v260_v38  ;;  %v320_v48 = vunpack.c.h.s8.bf16 %v260_v38 }
  0x68   : > { %664 = vmatmul.mubr.bf16.gmra.mxu0 %v271_v44  ;;  %v259_v44 = vld [vmem:[%s1793_s23 + $0xc0] sm:$0xff] }
  0x69   : > { %825 = vmatmul.mubr.bf16.gmra.mxu1 %v273_v45  ;;  %671 = vmatprep.mubr.bf16.mxu0 %v276_v46  ;;  %v261_v45 = vld [vmem:[%s1793_s23 + $0xd0] sm:$0xff]  ;;  %v315_v46 = vunpack.c.l.s8.bf16 %v259_v44 }
  0x6a   : > { %832 = vmatprep.mubr.bf16.mxu1 %v278_v47  ;;  %v317_v47 = vunpack.c.l.s8.bf16 %v261_v45 }
  0x70   : > { %672 = vmatmul.mubr.bf16.gmra.mxu0 %v275_v50  ;;  %v264_v50 = vld [vmem:[%s1793_s23 + $0xe8] sm:$0xff] }
  0x71   : > { %833 = vmatmul.mubr.bf16.gmra.mxu1 %v277_v51  ;;  %679 = vmatprep.mubr.bf16.mxu0 %v280_v52  ;;  %v266_v51 = vld [vmem:[%s1793_s23 + $0xf8] sm:$0xff]  ;;  %v319_v52 = vunpack.c.h.s8.bf16 %v259_v44  ;;  %v324_v54 = vunpack.c.l.s8.bf16 %v264_v50  ;;  %v328_v60 = vunpack.c.h.s8.bf16 %v264_v50 }
  0x72   : > { %840 = vmatprep.mubr.bf16.mxu1 %v282_v53  ;;  %v321_v53 = vunpack.c.h.s8.bf16 %v261_v45  ;;  %v326_v55 = vunpack.c.l.s8.bf16 %v266_v51  ;;  %v330_v61 = vunpack.c.h.s8.bf16 %v266_v51 }
  0x78   : > { %680 = vmatmul.mubr.bf16.gmra.mxu0 %v279_v56  ;;  %v263_v56 = vld [vmem:[%s1793_s23 + $0xe0] sm:$0xff] }
  0x79   : > { %841 = vmatmul.mubr.bf16.gmra.mxu1 %v281_v57  ;;  %687 = vmatprep.mubr.bf16.mxu0 %v284_v58  ;;  %v265_v57 = vld [vmem:[%s1793_s23 + $0xf0] sm:$0xff]  ;;  %v323_v58 = vunpack.c.l.s8.bf16 %v263_v56 }
  0x7a   : > { %848 = vmatprep.mubr.bf16.mxu1 %v286_v59  ;;  %v325_v59 = vunpack.c.l.s8.bf16 %v265_v57 }
  0x80   : > { %688 = vmatmul.mubr.bf16.gmra.mxu0 %v283_v62  ;;  %v327_v62 = vunpack.c.h.s8.bf16 %v263_v56 }
  0x81   : > { %849 = vmatmul.mubr.bf16.gmra.mxu1 %v285_v63  ;;  %695 = vmatprep.mubr.bf16.mxu0 %v288_v0  ;;  %v329_v63 = vunpack.c.h.s8.bf16 %v265_v57 }
  0x82   : > { %856 = vmatprep.mubr.bf16.mxu1 %v290_v1 }
  0x88   : > { %696 = vmatmul.mubr.bf16.gmra.mxu0 %v287_v4 }
  0x89   : > { %857 = vmatmul.mubr.bf16.gmra.mxu1 %v289_v5  ;;  %703 = vmatprep.mubr.bf16.mxu0 %v292_v6 }
  0x8a   : > { %864 = vmatprep.mubr.bf16.mxu1 %v294_v7 }
  0x90   : > { %704 = vmatmul.mubr.bf16.gmra.mxu0 %v291_v10 }
  0x91   : > { %865 = vmatmul.mubr.bf16.gmra.mxu1 %v293_v11  ;;  %711 = vmatprep.mubr.bf16.mxu0 %v296_v12 }
  0x92   : > { %872 = vmatprep.mubr.bf16.mxu1 %v298_v13 }
  0x98   : > { %712 = vmatmul.mubr.bf16.gmra.mxu0 %v295_v16 }
  0x99   : > { %873 = vmatmul.mubr.bf16.gmra.mxu1 %v297_v17  ;;  %719 = vmatprep.mubr.bf16.mxu0 %v300_v18 }
  0x9a   : > { %880 = vmatprep.mubr.bf16.mxu1 %v302_v19 }
  0xa0   : > { %720 = vmatmul.mubr.bf16.gmra.mxu0 %v299_v22 }
  0xa1   : > { %881 = vmatmul.mubr.bf16.gmra.mxu1 %v301_v23  ;;  %727 = vmatprep.mubr.bf16.mxu0 %v304_v24 }
  0xa2   : > { %888 = vmatprep.mubr.bf16.mxu1 %v306_v25 }
  0xa8   : > { %728 = vmatmul.mubr.bf16.gmra.mxu0 %v303_v28 }
  0xa9   : > { %889 = vmatmul.mubr.bf16.gmra.mxu1 %v305_v29  ;;  %735 = vmatprep.mubr.bf16.mxu0 %v308_v30 }
  0xaa   : > { %896 = vmatprep.mubr.bf16.mxu1 %v310_v31 }
  0xb0   : > { %736 = vmatmul.mubr.bf16.gmra.mxu0 %v307_v34 }
  0xb1   : > { %897 = vmatmul.mubr.bf16.gmra.mxu1 %v309_v35  ;;  %743 = vmatprep.mubr.bf16.mxu0 %v312_v36 }
  0xb2   : > { %904 = vmatprep.mubr.bf16.mxu1 %v314_v37 }
  0xb8   : > { %744 = vmatmul.mubr.bf16.gmra.mxu0 %v311_v40 }
  0xb9   : > { %905 = vmatmul.mubr.bf16.gmra.mxu1 %v313_v41  ;;  %751 = vmatprep.mubr.bf16.mxu0 %v316_v42 }
  0xba   : > { %912 = vmatprep.mubr.bf16.mxu1 %v318_v43 }
  0xc0   : > { %752 = vmatmul.mubr.bf16.gmra.mxu0 %v315_v46 }
  0xc1   : > { %913 = vmatmul.mubr.bf16.gmra.mxu1 %v317_v47  ;;  %759 = vmatprep.mubr.bf16.mxu0 %v320_v48 }
  0xc2   : > { %920 = vmatprep.mubr.bf16.mxu1 %v322_v49 }
  0xc8   : > { %760 = vmatmul.mubr.bf16.gmra.mxu0 %v319_v52 }
  0xc9   : > { %921 = vmatmul.mubr.bf16.gmra.mxu1 %v321_v53  ;;  %767 = vmatprep.mubr.bf16.mxu0 %v324_v54 }
  0xca   : > { %928 = vmatprep.mubr.bf16.mxu1 %v326_v55 }
  0xd0   : > { %768 = vmatmul.mubr.bf16.gmra.mxu0 %v323_v58 }
  0xd1   : > { %929 = vmatmul.mubr.bf16.gmra.mxu1 %v325_v59  ;;  %775 = vmatprep.mubr.bf16.mxu0 %v328_v60 }
  0xd2   : > { %936 = vmatprep.mubr.bf16.mxu1 %v330_v61 }
  0xd8   : > { %776 = vmatmul.mubr.bf16.gmra.mxu0 %v327_v62 }
  0xd9   : > { %937 = vmatmul.mubr.bf16.gmra.mxu1 %v329_v63 }
 0x120   : > { %v1188_v0 = vpop.f32.mrf.mxu0 }
 0x121   : > { %v1300_v1 = vpop.f32.mrf.mxu1 }
 0x122   : > { %v1189_v2 = vpop.f32.mrf.mxu0 }
 0x123   : > { %v1301_v3 = vpop.f32.mrf.mxu1  ;;  %v1190_v4 = vadd.f32 %v1189_v2, %v1188_v0 }
 0x124   : > { %v1302_v5 = vadd.f32 %v1301_v3, %v1300_v1  ;;  %v1191_v6 = vpop.f32.mrf.mxu0 }
 0x125   : > { %v1303_v7 = vpop.f32.mrf.mxu1 }
 0x126   : > { %v819_v8 = vadd.f32 %v1302_v5, %v1190_v4  ;;  %v1192_v9 = vpop.f32.mrf.mxu0 }
 0x127   : > { %v1304_v10 = vpop.f32.mrf.mxu1  ;;  %v1193_v11 = vadd.f32 %v1192_v9, %v1191_v6 }
 0x128   : > { %v1305_v12 = vadd.f32 %v1304_v10, %v1303_v7  ;;  %v1194_v13 = vpop.f32.mrf.mxu0  ;;  %977 = vst [vmem:[%s1837_s17] sm:$0xff] %v819_v8 }
 0x129   : > { %v1306_v14 = vpop.f32.mrf.mxu1 }
 0x12a   : > { %v822_v15 = vadd.f32 %v1305_v12, %v1193_v11  ;;  %v1195_v16 = vpop.f32.mrf.mxu0 }
 0x12b   : > { %v1307_v17 = vpop.f32.mrf.mxu1  ;;  %v1196_v18 = vadd.f32 %v1195_v16, %v1194_v13 }
 0x12c   : > { %v1308_v19 = vadd.f32 %v1307_v17, %v1306_v14  ;;  %v1197_v20 = vpop.f32.mrf.mxu0  ;;  %978 = vst [vmem:[%s1837_s17 + $0x8] sm:$0xff] %v822_v15 }
 0x12d   : > { %v1309_v21 = vpop.f32.mrf.mxu1 }
 0x12e   : > { %v827_v22 = vadd.f32 %v1308_v19, %v1196_v18  ;;  %v1198_v23 = vpop.f32.mrf.mxu0 }
 0x12f   : > { %v1310_v24 = vpop.f32.mrf.mxu1  ;;  %v1199_v25 = vadd.f32 %v1198_v23, %v1197_v20 }
 0x130   : > { %v1311_v26 = vadd.f32 %v1310_v24, %v1309_v21  ;;  %v1200_v27 = vpop.f32.mrf.mxu0  ;;  %979 = vst [vmem:[%s1837_s17 + $0x10] sm:$0xff] %v827_v22 }
 0x131   : > { %v1312_v28 = vpop.f32.mrf.mxu1 }
 0x132   : > { %v830_v29 = vadd.f32 %v1311_v26, %v1199_v25  ;;  %v1201_v30 = vpop.f32.mrf.mxu0 }
 0x133   : > { %v1313_v31 = vpop.f32.mrf.mxu1  ;;  %v1202_v32 = vadd.f32 %v1201_v30, %v1200_v27 }
 0x134   : > { %v1314_v33 = vadd.f32 %v1313_v31, %v1312_v28  ;;  %v1203_v34 = vpop.f32.mrf.mxu0  ;;  %980 = vst [vmem:[%s1837_s17 + $0x18] sm:$0xff] %v830_v29 }
 0x135   : > { %v1315_v35 = vpop.f32.mrf.mxu1 }
 0x136   : > { %v835_v36 = vadd.f32 %v1314_v33, %v1202_v32  ;;  %v1204_v37 = vpop.f32.mrf.mxu0 }
 0x137   : > { %v1316_v38 = vpop.f32.mrf.mxu1  ;;  %v1205_v39 = vadd.f32 %v1204_v37, %v1203_v34 }
 0x138   : > { %v1317_v40 = vadd.f32 %v1316_v38, %v1315_v35  ;;  %v1206_v41 = vpop.f32.mrf.mxu0  ;;  %981 = vst [vmem:[%s1837_s17 + $0x20] sm:$0xff] %v835_v36 }
 0x139   : > { %v1318_v42 = vpop.f32.mrf.mxu1 }
 0x13a   : > { %v838_v43 = vadd.f32 %v1317_v40, %v1205_v39  ;;  %v1207_v44 = vpop.f32.mrf.mxu0 }
 0x13b   : > { %v1319_v45 = vpop.f32.mrf.mxu1  ;;  %v1208_v46 = vadd.f32 %v1207_v44, %v1206_v41 }
 0x13c   : > { %v1320_v47 = vadd.f32 %v1319_v45, %v1318_v42  ;;  %v1209_v48 = vpop.f32.mrf.mxu0  ;;  %982 = vst [vmem:[%s1837_s17 + $0x28] sm:$0xff] %v838_v43 }
 0x13d   : > { %v1321_v49 = vpop.f32.mrf.mxu1 }
 0x13e   : > { %v843_v50 = vadd.f32 %v1320_v47, %v1208_v46  ;;  %v1210_v51 = vpop.f32.mrf.mxu0 }
 0x13f   : > { %v1322_v52 = vpop.f32.mrf.mxu1  ;;  %v1211_v53 = vadd.f32 %v1210_v51, %v1209_v48 }
 0x140   : > { %v1323_v54 = vadd.f32 %v1322_v52, %v1321_v49  ;;  %v1212_v55 = vpop.f32.mrf.mxu0  ;;  %983 = vst [vmem:[%s1837_s17 + $0x30] sm:$0xff] %v843_v50 }
 0x141   : > { %v1324_v56 = vpop.f32.mrf.mxu1 }
 0x142   : > { %v846_v57 = vadd.f32 %v1323_v54, %v1211_v53  ;;  %v1213_v58 = vpop.f32.mrf.mxu0 }
 0x143   : > { %v1325_v59 = vpop.f32.mrf.mxu1  ;;  %v1214_v60 = vadd.f32 %v1213_v58, %v1212_v55 }
 0x144   : > { %v1326_v61 = vadd.f32 %v1325_v59, %v1324_v56  ;;  %v1215_v62 = vpop.f32.mrf.mxu0  ;;  %984 = vst [vmem:[%s1837_s17 + $0x38] sm:$0xff] %v846_v57 }
 0x145   : > { %v1327_v63 = vpop.f32.mrf.mxu1 }
 0x146   : > { %v851_v0 = vadd.f32 %v1326_v61, %v1214_v60  ;;  %v1216_v1 = vpop.f32.mrf.mxu0 }
 0x147   : > { %v1328_v2 = vpop.f32.mrf.mxu1  ;;  %v1217_v3 = vadd.f32 %v1216_v1, %v1215_v62 }
 0x148   : > { %v1329_v4 = vadd.f32 %v1328_v2, %v1327_v63  ;;  %v1218_v5 = vpop.f32.mrf.mxu0  ;;  %985 = vst [vmem:[%s1837_s17 + $0x40] sm:$0xff] %v851_v0 }
 0x149   : > { %v1330_v6 = vpop.f32.mrf.mxu1 }
 0x14a   : > { %v854_v7 = vadd.f32 %v1329_v4, %v1217_v3  ;;  %v1219_v8 = vpop.f32.mrf.mxu0 }
 0x14b   : > { %v1331_v9 = vpop.f32.mrf.mxu1  ;;  %v1220_v10 = vadd.f32 %v1219_v8, %v1218_v5 }
 0x14c   : > { %v1332_v11 = vadd.f32 %v1331_v9, %v1330_v6  ;;  %v1221_v12 = vpop.f32.mrf.mxu0  ;;  %986 = vst [vmem:[%s1837_s17 + $0x48] sm:$0xff] %v854_v7 }
 0x14d   : > { %v1333_v13 = vpop.f32.mrf.mxu1 }
 0x14e   : > { %v859_v14 = vadd.f32 %v1332_v11, %v1220_v10  ;;  %v1222_v15 = vpop.f32.mrf.mxu0 }
 0x14f   : > { %v1334_v16 = vpop.f32.mrf.mxu1  ;;  %v1223_v17 = vadd.f32 %v1222_v15, %v1221_v12 }
 0x150   : > { %v1335_v18 = vadd.f32 %v1334_v16, %v1333_v13  ;;  %v1224_v19 = vpop.f32.mrf.mxu0  ;;  %987 = vst [vmem:[%s1837_s17 + $0x50] sm:$0xff] %v859_v14 }
 0x151   : > { %v1336_v20 = vpop.f32.mrf.mxu1 }
 0x152   : > { %v862_v21 = vadd.f32 %v1335_v18, %v1223_v17  ;;  %v1225_v22 = vpop.f32.mrf.mxu0 }
 0x153   : > { %v1337_v23 = vpop.f32.mrf.mxu1  ;;  %v1226_v24 = vadd.f32 %v1225_v22, %v1224_v19 }
 0x154   : > { %v1338_v25 = vadd.f32 %v1337_v23, %v1336_v20  ;;  %v1227_v26 = vpop.f32.mrf.mxu0  ;;  %988 = vst [vmem:[%s1837_s17 + $0x58] sm:$0xff] %v862_v21 }
 0x155   : > { %v1339_v27 = vpop.f32.mrf.mxu1 }
 0x156   : > { %v867_v28 = vadd.f32 %v1338_v25, %v1226_v24  ;;  %v1228_v29 = vpop.f32.mrf.mxu0 }
 0x157   : > { %v1340_v30 = vpop.f32.mrf.mxu1  ;;  %v1229_v31 = vadd.f32 %v1228_v29, %v1227_v26 }
 0x158   : > { %v1341_v32 = vadd.f32 %v1340_v30, %v1339_v27  ;;  %v1230_v33 = vpop.f32.mrf.mxu0  ;;  %989 = vst [vmem:[%s1837_s17 + $0x60] sm:$0xff] %v867_v28 }
 0x159   : > { %v1342_v34 = vpop.f32.mrf.mxu1 }
 0x15a   : > { %v870_v35 = vadd.f32 %v1341_v32, %v1229_v31  ;;  %v1231_v36 = vpop.f32.mrf.mxu0 }
 0x15b   : > { %v1343_v37 = vpop.f32.mrf.mxu1  ;;  %v1232_v38 = vadd.f32 %v1231_v36, %v1230_v33 }
 0x15c   : > { %v1344_v39 = vadd.f32 %v1343_v37, %v1342_v34  ;;  %v1233_v40 = vpop.f32.mrf.mxu0  ;;  %990 = vst [vmem:[%s1837_s17 + $0x68] sm:$0xff] %v870_v35 }
 0x15d   : > { %v1345_v41 = vpop.f32.mrf.mxu1 }
 0x15e   : > { %v875_v42 = vadd.f32 %v1344_v39, %v1232_v38  ;;  %v1234_v43 = vpop.f32.mrf.mxu0 }
 0x15f   : > { %v1346_v44 = vpop.f32.mrf.mxu1  ;;  %v1235_v45 = vadd.f32 %v1234_v43, %v1233_v40 }
 0x160   : > { %v1347_v46 = vadd.f32 %v1346_v44, %v1345_v41  ;;  %v1236_v47 = vpop.f32.mrf.mxu0  ;;  %991 = vst [vmem:[%s1837_s17 + $0x70] sm:$0xff] %v875_v42 }
 0x161   : > { %v1348_v48 = vpop.f32.mrf.mxu1 }
 0x162   : > { %v878_v49 = vadd.f32 %v1347_v46, %v1235_v45  ;;  %v1237_v50 = vpop.f32.mrf.mxu0 }
 0x163   : > { %v1349_v51 = vpop.f32.mrf.mxu1  ;;  %v1238_v52 = vadd.f32 %v1237_v50, %v1236_v47 }
 0x164   : > { %v1350_v53 = vadd.f32 %v1349_v51, %v1348_v48  ;;  %v1239_v54 = vpop.f32.mrf.mxu0  ;;  %992 = vst [vmem:[%s1837_s17 + $0x78] sm:$0xff] %v878_v49 }
 0x165   : > { %v1351_v55 = vpop.f32.mrf.mxu1 }
 0x166   : > { %v883_v56 = vadd.f32 %v1350_v53, %v1238_v52  ;;  %v1240_v57 = vpop.f32.mrf.mxu0 }
 0x167   : > { %v1352_v58 = vpop.f32.mrf.mxu1  ;;  %v1241_v59 = vadd.f32 %v1240_v57, %v1239_v54 }
 0x168   : > { %v1353_v60 = vadd.f32 %v1352_v58, %v1351_v55  ;;  %v1242_v61 = vpop.f32.mrf.mxu0  ;;  %993 = vst [vmem:[%s1837_s17 + $0x80] sm:$0xff] %v883_v56 }
 0x169   : > { %v1354_v62 = vpop.f32.mrf.mxu1 }
 0x16a   : > { %v886_v63 = vadd.f32 %v1353_v60, %v1241_v59  ;;  %v1243_v0 = vpop.f32.mrf.mxu0 }
 0x16b   : > { %v1355_v1 = vpop.f32.mrf.mxu1  ;;  %v1244_v2 = vadd.f32 %v1243_v0, %v1242_v61 }
 0x16c   : > { %v1356_v3 = vadd.f32 %v1355_v1, %v1354_v62  ;;  %v1245_v4 = vpop.f32.mrf.mxu0  ;;  %994 = vst [vmem:[%s1837_s17 + $0x88] sm:$0xff] %v886_v63 }
 0x16d   : > { %v1357_v5 = vpop.f32.mrf.mxu1 }
 0x16e   : > { %v891_v6 = vadd.f32 %v1356_v3, %v1244_v2  ;;  %v1246_v7 = vpop.f32.mrf.mxu0 }
 0x16f   : > { %v1358_v8 = vpop.f32.mrf.mxu1  ;;  %v1247_v9 = vadd.f32 %v1246_v7, %v1245_v4 }
 0x170   : > { %v1359_v10 = vadd.f32 %v1358_v8, %v1357_v5  ;;  %v1248_v11 = vpop.f32.mrf.mxu0  ;;  %995 = vst [vmem:[%s1837_s17 + $0x90] sm:$0xff] %v891_v6 }
 0x171   : > { %v1360_v12 = vpop.f32.mrf.mxu1 }
 0x172   : > { %v894_v13 = vadd.f32 %v1359_v10, %v1247_v9  ;;  %v1249_v14 = vpop.f32.mrf.mxu0 }
 0x173   : > { %v1361_v15 = vpop.f32.mrf.mxu1  ;;  %v1250_v16 = vadd.f32 %v1249_v14, %v1248_v11 }
 0x174   : > { %v1362_v17 = vadd.f32 %v1361_v15, %v1360_v12  ;;  %v1251_v18 = vpop.f32.mrf.mxu0  ;;  %996 = vst [vmem:[%s1837_s17 + $0x98] sm:$0xff] %v894_v13 }
 0x175   : > { %v1363_v19 = vpop.f32.mrf.mxu1 }
 0x176   : > { %v899_v20 = vadd.f32 %v1362_v17, %v1250_v16  ;;  %v1252_v21 = vpop.f32.mrf.mxu0 }
 0x177   : > { %v1364_v22 = vpop.f32.mrf.mxu1  ;;  %v1253_v23 = vadd.f32 %v1252_v21, %v1251_v18 }
 0x178   : > { %v1365_v24 = vadd.f32 %v1364_v22, %v1363_v19  ;;  %v1254_v25 = vpop.f32.mrf.mxu0  ;;  %997 = vst [vmem:[%s1837_s17 + $0xa0] sm:$0xff] %v899_v20 }
 0x179   : > { %v1366_v26 = vpop.f32.mrf.mxu1 }
 0x17a   : > { %v902_v27 = vadd.f32 %v1365_v24, %v1253_v23  ;;  %v1255_v28 = vpop.f32.mrf.mxu0 }
 0x17b   : > { %v1367_v29 = vpop.f32.mrf.mxu1  ;;  %v1256_v30 = vadd.f32 %v1255_v28, %v1254_v25 }
 0x17c   : > { %v1368_v31 = vadd.f32 %v1367_v29, %v1366_v26  ;;  %v1257_v32 = vpop.f32.mrf.mxu0  ;;  %998 = vst [vmem:[%s1837_s17 + $0xa8] sm:$0xff] %v902_v27 }
 0x17d   : > { %v1369_v33 = vpop.f32.mrf.mxu1 }
 0x17e   : > { %v907_v34 = vadd.f32 %v1368_v31, %v1256_v30  ;;  %v1258_v35 = vpop.f32.mrf.mxu0 }
 0x17f   : > { %v1370_v36 = vpop.f32.mrf.mxu1  ;;  %v1259_v37 = vadd.f32 %v1258_v35, %v1257_v32 }
 0x180   : > { %v1371_v38 = vadd.f32 %v1370_v36, %v1369_v33  ;;  %v1260_v39 = vpop.f32.mrf.mxu0  ;;  %999 = vst [vmem:[%s1837_s17 + $0xb0] sm:$0xff] %v907_v34 }
 0x181   : > { %v1372_v40 = vpop.f32.mrf.mxu1 }
 0x182   : > { %v910_v41 = vadd.f32 %v1371_v38, %v1259_v37  ;;  %v1261_v42 = vpop.f32.mrf.mxu0 }
 0x183   : > { %v1373_v43 = vpop.f32.mrf.mxu1  ;;  %v1262_v44 = vadd.f32 %v1261_v42, %v1260_v39 }
 0x184   : > { %v1374_v45 = vadd.f32 %v1373_v43, %v1372_v40  ;;  %v1263_v46 = vpop.f32.mrf.mxu0  ;;  %1000 = vst [vmem:[%s1837_s17 + $0xb8] sm:$0xff] %v910_v41 }
 0x185   : > { %v1375_v47 = vpop.f32.mrf.mxu1 }
 0x186   : > { %v915_v48 = vadd.f32 %v1374_v45, %v1262_v44  ;;  %v1264_v49 = vpop.f32.mrf.mxu0 }
 0x187   : > { %v1376_v50 = vpop.f32.mrf.mxu1  ;;  %v1265_v51 = vadd.f32 %v1264_v49, %v1263_v46 }
 0x188   : > { %v1377_v52 = vadd.f32 %v1376_v50, %v1375_v47  ;;  %v1266_v53 = vpop.f32.mrf.mxu0  ;;  %1001 = vst [vmem:[%s1837_s17 + $0xc0] sm:$0xff] %v915_v48 }
 0x189   : > { %v1378_v54 = vpop.f32.mrf.mxu1 }
 0x18a   : > { %v918_v55 = vadd.f32 %v1377_v52, %v1265_v51  ;;  %v1267_v56 = vpop.f32.mrf.mxu0 }
 0x18b   : > { %v1379_v57 = vpop.f32.mrf.mxu1  ;;  %v1268_v58 = vadd.f32 %v1267_v56, %v1266_v53 }
 0x18c   : > { %v1380_v59 = vadd.f32 %v1379_v57, %v1378_v54  ;;  %v1269_v60 = vpop.f32.mrf.mxu0  ;;  %1002 = vst [vmem:[%s1837_s17 + $0xc8] sm:$0xff] %v918_v55 }
 0x18d   : > { %v1381_v61 = vpop.f32.mrf.mxu1 }
 0x18e   : > { %v923_v62 = vadd.f32 %v1380_v59, %v1268_v58  ;;  %v1270_v63 = vpop.f32.mrf.mxu0 }
 0x18f   : > { %v1382_v0 = vpop.f32.mrf.mxu1  ;;  %v1271_v1 = vadd.f32 %v1270_v63, %v1269_v60 }
 0x190   : > { %v1383_v2 = vadd.f32 %v1382_v0, %v1381_v61  ;;  %v1272_v3 = vpop.f32.mrf.mxu0  ;;  %1003 = vst [vmem:[%s1837_s17 + $0xd0] sm:$0xff] %v923_v62 }
 0x191   : > { %v1384_v4 = vpop.f32.mrf.mxu1 }
 0x192   : > { %v926_v5 = vadd.f32 %v1383_v2, %v1271_v1  ;;  %v1273_v6 = vpop.f32.mrf.mxu0 }
 0x193   : > { %v1385_v7 = vpop.f32.mrf.mxu1  ;;  %v1274_v8 = vadd.f32 %v1273_v6, %v1272_v3 }
 0x194   : > { %v1386_v9 = vadd.f32 %v1385_v7, %v1384_v4  ;;  %v1275_v10 = vpop.f32.mrf.mxu0  ;;  %1004 = vst [vmem:[%s1837_s17 + $0xd8] sm:$0xff] %v926_v5 }
 0x195   : > { %v1387_v11 = vpop.f32.mrf.mxu1 }
 0x196   : > { %v931_v12 = vadd.f32 %v1386_v9, %v1274_v8  ;;  %v1276_v13 = vpop.f32.mrf.mxu0 }
 0x197   : > { %v1388_v14 = vpop.f32.mrf.mxu1  ;;  %v1277_v15 = vadd.f32 %v1276_v13, %v1275_v10 }
 0x198   : > { %v1389_v16 = vadd.f32 %v1388_v14, %v1387_v11  ;;  %v1278_v17 = vpop.f32.mrf.mxu0  ;;  %1005 = vst [vmem:[%s1837_s17 + $0xe0] sm:$0xff] %v931_v12 }
 0x199   : > { %v1390_v18 = vpop.f32.mrf.mxu1 }
 0x19a   : > { %v934_v19 = vadd.f32 %v1389_v16, %v1277_v15  ;;  %v1279_v20 = vpop.f32.mrf.mxu0 }
 0x19b   : > { %v1391_v21 = vpop.f32.mrf.mxu1  ;;  %v1280_v22 = vadd.f32 %v1279_v20, %v1278_v17 }
 0x19c   : > { %v1392_v23 = vadd.f32 %v1391_v21, %v1390_v18  ;;  %v1281_v24 = vpop.f32.mrf.mxu0  ;;  %1006 = vst [vmem:[%s1837_s17 + $0xe8] sm:$0xff] %v934_v19 }
 0x19d   : > { %v1393_v25 = vpop.f32.mrf.mxu1 }
 0x19e   : > { %v939_v26 = vadd.f32 %v1392_v23, %v1280_v22  ;;  %v1282_v27 = vpop.f32.mrf.mxu0 }
 0x19f   : > { %v1394_v28 = vpop.f32.mrf.mxu1  ;;  %v1283_v29 = vadd.f32 %v1282_v27, %v1281_v24 }
 0x1a0   : > { %v1395_v30 = vadd.f32 %v1394_v28, %v1393_v25  ;;  %1007 = vst [vmem:[%s1837_s17 + $0xf0] sm:$0xff] %v939_v26 }
 0x1a2   : > { %v942_v31 = vadd.f32 %v1395_v30, %v1283_v29 }
 0x1a4   : > { %1008 = vst [vmem:[%s1837_s17 + $0xf8] sm:$0xff] %v942_v31 }
 0x1a5   : > { %1575 = shalt.err (!%p1572_p5)
}
 0x1a6   : > { %s1576_s3 = scalar_lea.hbm %s1875_s27, 4096  ;;  %s1580_s8 = scalar_lea.hbm %s1928_s2, 8192 }
 0x1a7   : > { %p1577_p7 = scmp.ne.s32.totalorder %s1875_s27, %s1576_s3  ;;  %p1581_p9 = scmp.lt.s32.totalorder %s1875_s27, %s1928_s2 }
 0x1a8   : > { %p1582_p11 = scmp.lt.s32.totalorder %s1580_s8, %s1576_s3 }
 0x1a9   : > { %p1578_p6 = pnand %p1577_p7, %p1759_p13 }
 0x1aa   : > { %p1583_p10 = por %p1582_p11, %p1581_p9 }
 0x1ab   : > { %p1579_p4 = pneg %p1578_p6 }
 0x1ad   : > { %p1584_p1 = pnand %p1583_p10, %p1579_p4 }
 0x1af   : > { %1587 = shalt.err (!%p1584_p1)
}
 0x1b0   : > { %s1655_s23 = smov 128   ;;  %s1656_s17 = smov 8  }
 0x1b1   : > { %1402 = dma.vmem_to_hbm [thread:$0]  (%p1759_p13), %s1877_s21, 4096, %s1875_s27, %s1010_s18, %s1655_s23, %s1655_s23, %s1656_s17  }
 0x1b2 PF: > { %s1038_s19 = sand.u32 1, %s1626_s9   ;;  %p1940_p8 = scmp.ne.s32.totalorder %s1933_s20, 0 }
 0x1b3   : > { %p1941_p12 = scmp.ge.s32.totalorder %s1646_s14, 2  ;;  %s1039_s24 = scalar_lea.sflag [#allocation4], %s1038_s19 }
 0x1b5   : > { %p1413_p0 = pnand %p1941_p12, %p1940_p8 }
 0x1b7   : > { %p1414_p2 = pneg %p1413_p0 }
 0x1b9   : > { %1621 = dma.done.wait (%p1414_p2), %s1039_s24, 4096  }
 0x1ba   : > { %1623 = vsyncadd (%p1414_p2), %s1039_s24, 4294963200  ;;  %s19_s14 = sadd.s32 1, %s1646_s14   ;;  %s1942_s9 = smov %s1630_s10 }
 0x1bb   : > { %p16_p3 = scmp.ge.s32.totalorder %s19_s14, 4   ;;  %s1943_s10 = smov %s1634_s11 }
 0x1bc   : > { %s1944_s11 = smov %s1768_s15  ;;  %s1945_s12 = smov %s1642_s13 }
 0x1bd   : > { %s1946_s13 = smov %s1948_s25  ;;  %18 = sbr.rel (!%p16_p3) target bundleno = 7 (0x7), region = 82 }
 0x1c2   :  { %1044 = vsyncpa [#allocation3], 1 }
 0x1c3   :  { %1046 = vsyncpa [#allocation3 + $0x1], 1 }
 0x1c4   :  { %1047 = vsyncpa [#allocation6], 1 }
 0x1c5   :  { %1048 = vsyncpa [#allocation4], 1 }
 0x1c6   :  { %1050 = vsyncpa [#allocation4 + $0x1], 1 }

</bundles_post_ra>
